<compile_context>
chip_gen: v7x
topology: tpu7x:2x2x1
jax: 0.10.0
libtpu: 0.0.40
codegen_flags: <defaults>
</compile_context>

<pallas_src>
import functools

import jax
import jax.numpy as jnp
from jax import lax
from jax.experimental import pallas as pl
from jax.experimental.pallas import tpu as pltpu


def _self_attention_kernel(xq_ref, xkv_ref, wq_ref, bq_ref, wkv_ref, bkv_ref,
                           o_ref, *, scale, d):
    in_dtype = xq_ref.dtype

    xq = xq_ref[0]            # (tq, D) query tile, input dtype (MXU-native)
    xkv = xkv_ref[0]          # (S,  D) full sequence slab for keys/values

    # Q projection on the query tile. Weights are pre-transposed host-side so
    # nn.Linear's x @ W.T is just x @ wq_t (no in-kernel transpose).
    q = jnp.dot(xq, wq_ref[...], preferred_element_type=jnp.float32)
    q = (q + bq_ref[...].astype(jnp.float32)) * scale      # fold 1/sqrt(D) into q
    q = q.astype(in_dtype)

    # Fused K/V projection: one MXU pass with N = 2*D instead of two N = D.
    kv = jnp.dot(xkv, wkv_ref[...], preferred_element_type=jnp.float32)
    kv = kv + bkv_ref[...].astype(jnp.float32)
    k = kv[:, :d].astype(in_dtype)                          # (S, D)
    v = kv[:, d:].astype(in_dtype)                          # (S, D)

    # scores = q @ k^T, expressed as a transposed contraction (no k.T / XLU).
    scores = lax.dot_general(q, k, (((1,), (1,)), ((), ())),
                             preferred_element_type=jnp.float32)   # (tq, S)

    # Numerically stable softmax over the key axis (f32 math; approx
    # reciprocal runs on the otherwise-idle EUP slot).
    m = jnp.max(scores, axis=-1, keepdims=True)
    p = jnp.exp(scores - m)
    attn = p * pl.reciprocal(jnp.sum(p, axis=-1, keepdims=True), approx=True)

    # weighted = attention @ V (MXU operands back in the input dtype).
    out = jnp.dot(attn.astype(in_dtype), v, preferred_element_type=jnp.float32)
    # NOTE: with D < 128 the output store is not lane-dense; kept as-is to
    # preserve the module's (B, S, D) layout.
    o_ref[0] = out.astype(o_ref.dtype)


def _pick_q_tile(s, target=256):
    """Largest query-tile <= target that divides S (prefer multiples of 8)."""
    if s <= target:
        return s
    for t in range(target, 7, -1):
        if s % t == 0 and t % 8 == 0:
            return t
    for t in range(target, 0, -1):
        if s % t == 0:
            return t
    return s


def self_attention(x, wq, bq, wk, bk, wv, bv, *, q_tile=None):
    """x: (B, S, D); w*: (D, D) in nn.Linear (out, in) layout; b*: (D,)."""
    B, S, D = x.shape
    scale = 1.0 / (D ** 0.5)
    tq = q_tile if q_tile is not None else _pick_q_tile(S)
    assert S % tq == 0, "query tile must divide the sequence length"

    # Host-side weight prep: pre-transpose (nn.Linear does x @ W.T) and fuse
    # the key/value projections along the output axis.
    wq_t = wq.T                                       # (D, D)
    wkv_t = jnp.concatenate([wk.T, wv.T], axis=1)     # (D, 2D)
    bq2 = bq.reshape(1, D)
    bkv2 = jnp.concatenate([bk, bv]).reshape(1, 2 * D)

    kernel = functools.partial(_self_attention_kernel, scale=scale, d=D)

    # Whole-array VMEM residents: constant across the grid, no per-step
    # double-buffering.
    vmem_full = pl.BlockSpec(memory_space=pltpu.MemorySpace.VMEM)

    return pl.pallas_call(
        kernel,
        out_shape=jax.ShapeDtypeStruct((B, S, D), x.dtype),
        grid_spec=pltpu.PrefetchScalarGridSpec(
            num_scalar_prefetch=0,
            grid=(B, S // tq),
            in_specs=[
                pl.BlockSpec((1, tq, D), lambda b, qi: (b, qi, 0)),  # x (query tile)
                pl.BlockSpec((1, S, D), lambda b, qi: (b, 0, 0)),    # x (full seq, K/V)
                vmem_full,   # wq_t
                vmem_full,   # bq
                vmem_full,   # wkv_t
                vmem_full,   # bkv
            ],
            out_specs=pl.BlockSpec((1, tq, D), lambda b, qi: (b, qi, 0)),
        ),
        compiler_params=pltpu.CompilerParams(
            dimension_semantics=("parallel", "parallel"),
            vmem_limit_bytes=48 * 1024 * 1024,
        ),
    )(x, x, wq_t, bq2, wkv_t, bkv2)


def _reference(x, wq, bq, wk, bk, wv, bv):
    D = x.shape[-1]
    q = jnp.einsum("bsd,ed->bse", x, wq) + bq
    k = jnp.einsum("bsd,ed->bse", x, wk) + bk
    v = jnp.einsum("bsd,ed->bse", x, wv) + bv
    scores = jnp.einsum("bqd,bkd->bqk", q, k) / (D ** 0.5)
    attn = jax.nn.softmax(scores, axis=2)
    return jnp.einsum("bqk,bkd->bqd", attn, v)


if __name__ == "__main__":
    B, S, D = 2, 8, 32

    key = jax.random.PRNGKey(0)
    kx, kwq, kbq, kwk, kbk, kwv, kbv = jax.random.split(key, 7)

    # Deterministic parameter init (mimicking nn.Linear's uniform fan-in init).
    lim = 1.0 / (D ** 0.5)
    x = jax.random.normal(kx, (B, S, D), dtype=jnp.float32)
    wq = jax.random.uniform(kwq, (D, D), jnp.float32, -lim, lim)
    bq = jax.random.uniform(kbq, (D,), jnp.float32, -lim, lim)
    wk = jax.random.uniform(kwk, (D, D), jnp.float32, -lim, lim)
    bk = jax.random.uniform(kbk, (D,), jnp.float32, -lim, lim)
    wv = jax.random.uniform(kwv, (D, D), jnp.float32, -lim, lim)
    bv = jax.random.uniform(kbv, (D,), jnp.float32, -lim, lim)

    out = self_attention(x, wq, bq, wk, bk, wv, bv)
    out = jax.block_until_ready(out)

    ref = _reference(x, wq, bq, wk, bk, wv, bv)
    assert out.shape == (B, S, D)
    # Tolerance loosened slightly for the approximate (EUP) softmax reciprocal.
    assert jnp.allclose(out, ref, atol=1e-2, rtol=1e-2), "mismatch vs reference"

    print("KERNEL_OK")
</pallas_src>

<mosaic_0001>
module attributes {stable_mosaic.version = 11 : i64} {
  func.func @_self_attention_kernel(%arg0: i32, %arg1: i32, %arg2: memref<1x8x32xf32, #tpu.memory_space<vmem>>, %arg3: memref<1x8x32xf32, #tpu.memory_space<vmem>>, %arg4: memref<32x32xf32, #tpu.memory_space<vmem>>, %arg5: memref<1x32xf32, #tpu.memory_space<vmem>>, %arg6: memref<32x64xf32, #tpu.memory_space<vmem>>, %arg7: memref<1x64xf32, #tpu.memory_space<vmem>>, %arg8: memref<1x8x32xf32, #tpu.memory_space<vmem>>) attributes {dimension_semantics = [#tpu.dimension_semantics<parallel>, #tpu.dimension_semantics<parallel>], iteration_bounds = array<i64: 2, 1>, scalar_prefetch = 0 : i64, scratch_operands = 0 : i64, tpu.core_type = #tpu.core_type<tc>, window_params = [{transform_indices = @transform_0, window_bounds = array<i64: 1, 8, 32>}, {transform_indices = @transform_1, window_bounds = array<i64: 1, 8, 32>}, {pipeline_mode = #tpu.pipeline_mode<synchronous>, transform_indices = @transform_2, window_bounds = array<i64: 32, 32>}, {pipeline_mode = #tpu.pipeline_mode<synchronous>, transform_indices = @transform_3, window_bounds = array<i64: 1, 32>}, {pipeline_mode = #tpu.pipeline_mode<synchronous>, transform_indices = @transform_4, window_bounds = array<i64: 32, 64>}, {pipeline_mode = #tpu.pipeline_mode<synchronous>, transform_indices = @transform_5, window_bounds = array<i64: 1, 64>}, {transform_indices = @transform_6, window_bounds = array<i64: 1, 8, 32>}]} {
    %c0 = arith.constant 0 : index
    %c0_0 = arith.constant 0 : index
    %c0_1 = arith.constant 0 : index
    %0 = vector.load %arg2[%c0, %c0_0, %c0_1] : memref<1x8x32xf32, #tpu.memory_space<vmem>>, vector<1x8x32xf32>
    %1 = vector.shape_cast %0 : vector<1x8x32xf32> to vector<8x32xf32>
    %c0_2 = arith.constant 0 : index
    %c0_3 = arith.constant 0 : index
    %c0_4 = arith.constant 0 : index
    %2 = vector.load %arg3[%c0_2, %c0_3, %c0_4] : memref<1x8x32xf32, #tpu.memory_space<vmem>>, vector<1x8x32xf32>
    %3 = vector.shape_cast %2 : vector<1x8x32xf32> to vector<8x32xf32>
    %c0_5 = arith.constant 0 : index
    %c0_6 = arith.constant 0 : index
    %4 = vector.load %arg4[%c0_5, %c0_6] : memref<32x32xf32, #tpu.memory_space<vmem>>, vector<32x32xf32>
    %cst = arith.constant dense<0.000000e+00> : vector<8x32xf32>
    %5 = tpu.matmul %1, %4, %cst {dimension_numbers = #tpu.dot_dimension_numbers<[1], [0], [0], [1], [0, 0, 1, 1], [], []>} : vector<8x32xf32>, vector<32x32xf32>, vector<8x32xf32> -> vector<8x32xf32>
    %c0_7 = arith.constant 0 : index
    %c0_8 = arith.constant 0 : index
    %6 = vector.load %arg5[%c0_7, %c0_8] : memref<1x32xf32, #tpu.memory_space<vmem>>, vector<1x32xf32>
    %7 = vector.broadcast %6 : vector<1x32xf32> to vector<8x32xf32>
    %8 = arith.addf %5, %7 : vector<8x32xf32>
    %cst_9 = arith.constant 0.176776692 : f32
    %9 = vector.broadcast %cst_9 : f32 to vector<8x32xf32>
    %10 = arith.mulf %8, %9 : vector<8x32xf32>
    %c0_10 = arith.constant 0 : index
    %c0_11 = arith.constant 0 : index
    %11 = vector.load %arg6[%c0_10, %c0_11] : memref<32x64xf32, #tpu.memory_space<vmem>>, vector<32x64xf32>
    %cst_12 = arith.constant dense<0.000000e+00> : vector<8x64xf32>
    %12 = tpu.matmul %3, %11, %cst_12 {dimension_numbers = #tpu.dot_dimension_numbers<[1], [0], [0], [1], [0, 0, 1, 1], [], []>} : vector<8x32xf32>, vector<32x64xf32>, vector<8x64xf32> -> vector<8x64xf32>
    %c0_13 = arith.constant 0 : index
    %c0_14 = arith.constant 0 : index
    %13 = vector.load %arg7[%c0_13, %c0_14] : memref<1x64xf32, #tpu.memory_space<vmem>>, vector<1x64xf32>
    %14 = vector.broadcast %13 : vector<1x64xf32> to vector<8x64xf32>
    %15 = arith.addf %12, %14 : vector<8x64xf32>
    %16 = vector.extract_strided_slice %15 {offsets = [0, 0], sizes = [8, 32], strides = [1, 1]} : vector<8x64xf32> to vector<8x32xf32>
    %17 = vector.extract_strided_slice %15 {offsets = [0, 32], sizes = [8, 32], strides = [1, 1]} : vector<8x64xf32> to vector<8x32xf32>
    %cst_15 = arith.constant dense<0.000000e+00> : vector<8x8xf32>
    %18 = tpu.matmul %10, %16, %cst_15 {dimension_numbers = #tpu.dot_dimension_numbers<[1], [1], [0], [0], [0, 0, 1, 0], [], []>} : vector<8x32xf32>, vector<8x32xf32>, vector<8x8xf32> -> vector<8x8xf32>
    %cst_16 = arith.constant dense<0xFF800000> : vector<8xf32>
    %19 = vector.multi_reduction <maximumf>, %18, %cst_16 [1] : vector<8x8xf32> to vector<8xf32>
    %20 = vector.shape_cast %19 : vector<8xf32> to vector<8x1xf32>
    %21 = vector.broadcast %20 : vector<8x1xf32> to vector<8x8xf32>
    %22 = arith.subf %18, %21 : vector<8x8xf32>
    %23 = math.exp %22 : vector<8x8xf32>
    %cst_17 = arith.constant dense<0.000000e+00> : vector<8xf32>
    %24 = vector.multi_reduction <add>, %23, %cst_17 [1] : vector<8x8xf32> to vector<8xf32>
    %25 = vector.shape_cast %24 : vector<8xf32> to vector<8x1xf32>
    %26 = tpu.reciprocal %25 {approx = true} : vector<8x1xf32> -> vector<8x1xf32>
    %27 = vector.broadcast %26 : vector<8x1xf32> to vector<8x8xf32>
    %28 = arith.mulf %23, %27 : vector<8x8xf32>
    %cst_18 = arith.constant dense<0.000000e+00> : vector<8x32xf32>
    %29 = tpu.matmul %28, %17, %cst_18 {dimension_numbers = #tpu.dot_dimension_numbers<[1], [0], [0], [1], [0, 0, 1, 1], [], []>} : vector<8x8xf32>, vector<8x32xf32>, vector<8x32xf32> -> vector<8x32xf32>
    %c0_19 = arith.constant 0 : index
    %c0_20 = arith.constant 0 : index
    %c0_21 = arith.constant 0 : index
    %30 = vector.load %arg8[%c0_19, %c0_20, %c0_21] : memref<1x8x32xf32, #tpu.memory_space<vmem>>, vector<1x8x32xf32>
    %31 = vector.shape_cast %30 : vector<1x8x32xf32> to vector<8x32xf32>
    %32 = vector.shape_cast %29 : vector<8x32xf32> to vector<1x8x32xf32>
    tpu.vector_store %arg8[%c0_19, %c0_20, %c0_21], %32 {strides = array<i32>} : memref<1x8x32xf32, #tpu.memory_space<vmem>>, vector<1x8x32xf32>,
    return
  }
  func.func @transform_0(%arg0: i32, %arg1: i32) -> (i32, i32, i32) {
    %c0_i32 = arith.constant 0 : i32
    %c0_i32_0 = arith.constant 0 : i32
    return %arg0, %arg1, %c0_i32 : i32, i32, i32
  }
  func.func @transform_1(%arg0: i32, %arg1: i32) -> (i32, i32, i32) {
    %c0_i32 = arith.constant 0 : i32
    %c0_i32_0 = arith.constant 0 : i32
    %c0_i32_1 = arith.constant 0 : i32
    return %arg0, %c0_i32, %c0_i32_0 : i32, i32, i32
  }
  func.func @transform_2(%arg0: i32, %arg1: i32) -> (i32, i32) {
    %c0_i32 = arith.constant 0 : i32
    %c0_i32_0 = arith.constant 0 : i32
    %c0_i32_1 = arith.constant 0 : i32
    return %c0_i32, %c0_i32_0 : i32, i32
  }
  func.func @transform_3(%arg0: i32, %arg1: i32) -> (i32, i32) {
    %c0_i32 = arith.constant 0 : i32
    %c0_i32_0 = arith.constant 0 : i32
    %c0_i32_1 = arith.constant 0 : i32
    return %c0_i32, %c0_i32_0 : i32, i32
  }
  func.func @transform_4(%arg0: i32, %arg1: i32) -> (i32, i32) {
    %c0_i32 = arith.constant 0 : i32
    %c0_i32_0 = arith.constant 0 : i32
    %c0_i32_1 = arith.constant 0 : i32
    return %c0_i32, %c0_i32_0 : i32, i32
  }
  func.func @transform_5(%arg0: i32, %arg1: i32) -> (i32, i32) {
    %c0_i32 = arith.constant 0 : i32
    %c0_i32_0 = arith.constant 0 : i32
    %c0_i32_1 = arith.constant 0 : i32
    return %c0_i32, %c0_i32_0 : i32, i32
  }
  func.func @transform_6(%arg0: i32, %arg1: i32) -> (i32, i32, i32) {
    %c0_i32 = arith.constant 0 : i32
    %c0_i32_0 = arith.constant 0 : i32
    return %arg0, %arg1, %c0_i32 : i32, i32, i32
  }
}

</mosaic_0001>

<bundles_post_ra>
// kernel: tpu_custom_call.1
= control target key start
LH: loop header
LB: loop body
LE: loop exit
PB: predicated region body
PF: predicated region fallthrough
CT: control target
= control target key end

     0   :  { %s1576_s0 = inlined_call_operand.hbm [shape: f32[2,8,32], index: 0, kind: input, shape index: {}]   ;;  %s1577_s1 = inlined_call_operand.hbm [shape: f32[2,8,32], index: 1, kind: input, shape index: {}]   ;;  %s1578_s2 = inlined_call_operand.hbm [shape: f32[32,32], index: 2, kind: input, shape index: {}]   ;;  %s1579_s3 = inlined_call_operand.vmem [shape: f32[1,32], index: 3, kind: input, shape index: {}]   ;;  %s1580_s4 = inlined_call_operand.hbm [shape: f32[32,64], index: 4, kind: input, shape index: {}]   ;;  %s1581_s5 = inlined_call_operand.vmem [shape: f32[1,64], index: 5, kind: input, shape index: {}]   ;;  %s1582_s6 = inlined_call_operand.hbm [shape: f32[2,8,32], index: 6, kind: output, shape index: {}]  }
   0x1   :  { %1589 = sst [smem:[#allocation19_spill]] %s1578_s2 }
   0x2   :  { %1590 = sst [smem:[#allocation20_spill]] %s1580_s4 }
   0x3   :  { %11 = vsyncpa [#allocation3], 0 }
   0x4   :  { %13 = vsyncpa [#allocation3 + $0x1], 0 }
   0x5   :  { %14 = vsyncpa [#allocation6], 0 }
   0x6   :  { %16 = vsyncpa [#allocation6 + $0x1], 0 }
   0x7   :  { %17 = vsyncpa [#allocation9], 0 }
   0x8   :  { %18 = vsyncpa [#allocation4], 0 }
   0x9   :  { %20 = vsyncpa [#allocation4 + $0x1], 0  ;;  %s1265_s21 = smov 0   ;;  %s1267_s22 = smov 0  }
   0xa   :  { %s1269_s23 = smov 0   ;;  %s1271_s24 = smov 0  }
   0xb   :  { %s1273_s25 = smov 0   ;;  %s1275_s26 = smov 0  }
   0xc LB: > { %1591 = sst [smem:[#allocation16_spill]] %s1213_s25  ;;  %s1296_s27 = sadd.s32 4294967295, %s1217_s26   ;;  %s1217_s26 = sphi %s1275_s26, %s26_s26   ;;  %s1213_s25 = sphi %s1273_s25, %s1614_s25   ;;  %s1209_s24 = sphi %s1271_s24, %s1613_s24   ;;  %s1205_s23 = sphi %s1269_s23, %s1617_s23   ;;  %s1201_s22 = sphi %s1267_s22, %s1616_s22   ;;  %s1197_s21 = sphi %s1265_s21, %s1615_s21  }
   0xd   : > { %s825_s28 = sadd.s32 4294967294, %s1217_s26   ;;  %p60_p0 = scmp.ne.s32.totalorder %s1201_s22, %s1197_s21 }
   0xe   : > { %p1583_p1 = scmp.eq.s32.totalorder %s1296_s27, 0  ;;  %p202_p3 = scmp.eq.s32.totalorder %s825_s28, 1 }
   0xf   : > { %p826_p5 = scmp.ge.s32.totalorder %s1217_s26, 1  ;;  %p209_p7 = scmp.lt.s32.totalorder %s1217_s26, 3 }
  0x10   : > { %p1305_p4 = por %p1583_p1, %p60_p0  ;;  %p1310_p6 = por %p202_p3, %p60_p0 }
  0x11   : > { %p1315_p8 = pnand %p826_p5, %p209_p7  ;;  %s1219_s8 = smov [#allocation7]  }
  0x12   : > { %s1592_s29 = scalar_select %p1305_p4, 1, 0 }
  0x13   : > { %s1593_s30 = scalar_select %p1310_p6, 1, 0 }
  0x14   : > { %s1594_s7 = scalar_select %p1315_p8, 1, 0 }
  0x15   : > { %s221_s9 = sshll.u32 %s1219_s8, 4  ;;  %p923_p9 = pneg %p1315_p8  ;;  %s1319_s9 = int_to_ptr.vmem [resolvable:$true] %s221_s9 }
  0x16   : > { %s1220_s11 = smov [#allocation8]   ;;  %s1596_s2 = sld [smem:[#allocation19_spill]] }
  0x17   : > { %p1326_p11 = pnand %p923_p9, %p1583_p1  ;;  %s237_s12 = sshll.u32 %s1220_s11, 4  ;;  %s1330_s12 = int_to_ptr.vmem [resolvable:$true] %s237_s12 }
  0x19   : > { %p1009_p13 = pneg %p1326_p11 }
  0x1c   : > { %s1007_s15 = scalar_lea.hbm %s1596_s2, 512 }
  0x1d   : > { %p1008_p12 = scmp.ne.s32.totalorder %s1596_s2, %s1007_s15  ;;  %p1014_p5 = scmp.lt.u32.totalorder %s1007_s15, %s1596_s2 }
  0x1f   : > { %p1010_p0 = pnand %p1009_p13, %p1008_p12 }
  0x21   : > { %p1011_p3 = pneg %p1010_p0 }
  0x23   : > { %p1016_p7 = pnand %p1014_p5, %p1011_p3 }
  0x25   : > { %1019 = shalt.err (!%p1016_p7)
}
  0x26   : > { %s1020_s20 = scalar_lea.vmem %s1319_s9, 512  ;;  %p1028_p2 = scmp.lt.s32.totalorder %s1319_s9, %s1319_s9 }
  0x27   : > { %p1021_p9 = scmp.ne.s32.totalorder %s1319_s9, %s1020_s20  ;;  %p1029_p12 = scmp.lt.s32.totalorder %s1020_s20, %s1020_s20 }
  0x29   : > { %p1023_p10 = pnand %p1021_p9, %p1009_p13  ;;  %p1030_p0 = por %p1029_p12, %p1028_p2 }
  0x2b   : > { %p1024_p1 = pneg %p1023_p10 }
  0x2d   : > { %p1031_p6 = pnand %p1030_p0, %p1024_p1 }
  0x2f   : > { %1034 = shalt.err (!%p1031_p6)
}
  0x30   : > { %s1221_s28 = smov 128   ;;  %s1222_s8 = smov 8  }
  0x31   : > { %926 = dma.hbm_to_vmem [thread:$0]  (!%p1326_p11), %s1596_s2, 512, %s1319_s9, [#allocation6], %s1221_s28, %s1221_s28, %s1222_s8  }
  0x32   : > { %s1597_s4 = sld [smem:[#allocation20_spill]] }
  0x38   : > { %s1035_s16 = scalar_lea.hbm %s1597_s4, 512 }
  0x39   : > { %p1036_p2 = scmp.ne.s32.totalorder %s1597_s4, %s1035_s16  ;;  %p1042_p10 = scmp.lt.u32.totalorder %s1035_s16, %s1597_s4 }
  0x3b   : > { %p1038_p1 = pnand %p1036_p2, %p1009_p13 }
  0x3d   : > { %p1039_p6 = pneg %p1038_p1 }
  0x3f   : > { %p1044_p3 = pnand %p1042_p10, %p1039_p6 }
  0x41   : > { %1047 = shalt.err (!%p1044_p3)
}
  0x42   : > { %s1048_s9 = scalar_lea.vmem %s1330_s12, 512  ;;  %p1056_p12 = scmp.lt.s32.totalorder %s1330_s12, %s1330_s12 }
  0x43   : > { %p1049_p5 = scmp.ne.s32.totalorder %s1330_s12, %s1048_s9  ;;  %p1057_p0 = scmp.lt.s32.totalorder %s1048_s9, %s1048_s9 }
  0x45   : > { %p1051_p7 = pnand %p1049_p5, %p1009_p13  ;;  %p1058_p2 = por %p1057_p0, %p1056_p12 }
  0x47   : > { %p1052_p9 = pneg %p1051_p7 }
  0x49   : > { %p1059_p1 = pnand %p1058_p2, %p1052_p9 }
  0x4b   : > { %1062 = shalt.err (!%p1059_p1)
}
  0x4c   : > { %929 = dma.hbm_to_vmem [thread:$0]  (!%p1326_p11), %s1597_s4, 512, %s1330_s12, [#allocation9], %s1221_s28, %s1221_s28, %s1222_s8  }
  0x4d   : > { %s38_s14 = sadd.s32 1, %s1213_s25  ;;  %s47_s15 = sadd.s32 1, %s1205_s23 }
  0x4e   : > { %p40_p13 = scmp.ge.s32.totalorder %s38_s14, 2  ;;  %p54_p6 = scmp.ne.s32.totalorder %s1205_s23, %s1201_s22 }
  0x4f   : > { %p55_p10 = scmp.eq.s32.totalorder %s1217_s26, 0  ;;  %p943_p3 = scmp.lt.s32.totalorder %s1217_s26, 2 }
  0x50   : > { %s1619_s14 = smov (%p40_p13, %s38_s14), 0  ;;  %p1599_p7 = scmp.eq.s32.totalorder %s1296_s27, 1 }
  0x51   : > { %1598 = sst [smem:[#allocation17_spill]] %s1619_s14  ;;  %p56_p5 = por %p55_p10, %p54_p6 }
  0x52   : > { %p1394_p9 = por %p1599_p7, %p54_p6  ;;  %s42_s16 = ssub.s32 %s1213_s25, %s1619_s14 }
  0x53   : > { %s254_s17 = sand.u32 1, %s1205_s23   ;;  %p45_p12 = scmp.eq.s32.totalorder %s42_s16, 0 }
  0x54   : > { %s1600_s10 = scalar_select %p1394_p9, 1, 0 }
  0x55   : > { %s1401_s12 = sshll.u32 %s254_s17, 3  ;;  %s831_s28 = sshll.u32 %s1213_s25, 7 }
  0x56   : > { %s1405_s8 = scalar_select %p45_p12, %s1205_s23, %s47_s15  }
  0x57   : > { %s1410_s20 = scalar_lea.hbm %s1576_s0, %s831_s28  ;;  %s258_s9 = scalar_lea.vmem [#allocation2], %s1401_s12 }
  0x58   : > { %1601 = sst [smem:[#allocation18_spill]] %s1405_s8  ;;  %s266_s11 = sshll.u32 %s258_s9, 4  ;;  %s1419_s11 = int_to_ptr.vmem [resolvable:$true] %s266_s11 }
  0x59   : > { %p1415_p11 = pnand %p943_p3, %p56_p5  ;;  %s1424_s18 = scalar_lea.hbm %s1577_s1, %s831_s28 }
  0x5a   : > { %s255_s19 = scalar_lea.sflag [#allocation3], %s254_s17  ;;  %s1063_s2 = scalar_lea.hbm %s1410_s20, 128 }
  0x5b   : > { %p1064_p0 = scmp.ne.s32.totalorder %s1410_s20, %s1063_s2  ;;  %p1065_p2 = pneg %p1415_p11 }
  0x5c   : > { %s1068_s14 = scalar_lea.hbm %s1576_s0, 256  ;;  %p1069_p6 = scmp.lt.u32.totalorder %s1410_s20, %s1576_s0 }
  0x5d   : > { %p1066_p1 = pnand %p1065_p2, %p1064_p0  ;;  %p1070_p10 = scmp.lt.u32.totalorder %s1068_s14, %s1063_s2 }
  0x5e   : > { %p1072_p5 = scmp.lt.u32.totalorder %s1063_s2, %s1410_s20 }
  0x5f   : > { %p1067_p13 = pneg %p1066_p1  ;;  %p1071_p3 = por %p1070_p10, %p1069_p6 }
  0x61   : > { %p1073_p7 = por %p1072_p5, %p1071_p3 }
  0x63   : > { %p1074_p12 = pnand %p1073_p7, %p1067_p13 }
  0x65   : > { %1077 = shalt.err (!%p1074_p12)
}
  0x66   : > { %s1078_s17 = scalar_lea.vmem %s1419_s11, 128  ;;  %s1223_s4 = smov [#allocation2]  }
  0x67   : > { %p1079_p0 = scmp.ne.s32.totalorder %s1419_s11, %s1078_s17  ;;  %s1083_s28 = sshll.u32 %s1223_s4, 4  ;;  %s1084_s28 = int_to_ptr.vmem [resolvable:$false] %s1083_s28 }
  0x68   : > { %s1085_s25 = scalar_lea.vmem %s1084_s28, 256  ;;  %p1086_p4 = scmp.lt.s32.totalorder %s1419_s11, %s1084_s28 }
  0x69   : > { %p1081_p1 = pnand %p1079_p0, %p1065_p2  ;;  %p1087_p6 = scmp.lt.s32.totalorder %s1085_s25, %s1078_s17 }
  0x6b   : > { %p1082_p9 = pneg %p1081_p1  ;;  %p1088_p10 = por %p1087_p6, %p1086_p4 }
  0x6d   : > { %p1089_p3 = pnand %p1088_p10, %p1082_p9 }
  0x6f   : > { %1092 = shalt.err (!%p1089_p3)
}
  0x70   : > { %933 = dma.hbm_to_vmem [thread:$0]  (!%p1415_p11), %s1410_s20, 128, %s1419_s11, %s255_s19  }
  0x71   : > { %s273_s2 = sand.u32 1, %s1217_s26   ;;  %s277_s14 = scalar_lea.vmem [#allocation5], %s1401_s12 }
  0x72   : > { %s284_s8 = sshll.u32 %s277_s14, 4  ;;  %s274_s15 = scalar_lea.sflag [#allocation6], %s273_s2  ;;  %s285_s8 = int_to_ptr.vmem [resolvable:$true] %s284_s8 }
  0x73   : > { %s1093_s16 = scalar_lea.hbm %s1424_s18, 128  ;;  %s1098_s4 = scalar_lea.hbm %s1577_s1, 256 }
  0x74   : > { %p1094_p4 = scmp.ne.s32.totalorder %s1424_s18, %s1093_s16  ;;  %p1099_p5 = scmp.lt.u32.totalorder %s1424_s18, %s1577_s1 }
  0x75   : > { %p1100_p7 = scmp.lt.u32.totalorder %s1098_s4, %s1093_s16  ;;  %p1102_p0 = scmp.lt.u32.totalorder %s1093_s16, %s1424_s18 }
  0x76   : > { %p1096_p9 = pnand %p1094_p4, %p1065_p2 }
  0x77   : > { %p1101_p12 = por %p1100_p7, %p1099_p5 }
  0x78   : > { %p1097_p13 = pneg %p1096_p9 }
  0x79   : > { %p1103_p1 = por %p1102_p0, %p1101_p12 }
  0x7b   : > { %p1104_p6 = pnand %p1103_p1, %p1097_p13 }
  0x7d   : > { %1107 = shalt.err (!%p1104_p6)
}
  0x7e   : > { %s1108_s12 = scalar_lea.vmem %s285_s8, 128  ;;  %s1224_s20 = smov [#allocation5]  }
  0x7f   : > { %p1109_p10 = scmp.ne.s32.totalorder %s285_s8, %s1108_s12  ;;  %s1113_s11 = sshll.u32 %s1224_s20, 4  ;;  %s1114_s11 = int_to_ptr.vmem [resolvable:$false] %s1113_s11 }
  0x80   : > { %s1115_s19 = scalar_lea.vmem %s1114_s11, 256  ;;  %p1116_p9 = scmp.lt.s32.totalorder %s285_s8, %s1114_s11 }
  0x81   : > { %p1111_p3 = pnand %p1109_p10, %p1065_p2  ;;  %p1117_p8 = scmp.lt.s32.totalorder %s1115_s19, %s1108_s12 }
  0x83   : > { %p1112_p4 = pneg %p1111_p3  ;;  %p1118_p5 = por %p1117_p8, %p1116_p9 }
  0x85   : > { %p1119_p7 = pnand %p1118_p5, %p1112_p4 }
  0x87   : > { %1122 = shalt.err (!%p1119_p7)
}
  0x88   : > { %936 = dma.hbm_to_vmem [thread:$0]  (!%p1415_p11), %s1424_s18, 128, %s285_s8, %s274_s15  }
  0x89   : > { %p1603_p13 = scmp.ne.s32.totalorder %s1594_s7, 0 }
  0x8a   : > { %s1475_s2 = sand.u32 (!%p1603_p13), 1, %s1201_s22   ;;  %p1604_p8 = scmp.ne.s32.totalorder (!%p1603_p13), %s1592_s29, 0 }
  0x8b   : > { %293 = sbr.rel (%p1603_p13) target bundleno = 1137 (0x471), region = 44  ;;  %s1478_s14 = sshll.u32 (!%p1603_p13), %s1475_s2, 3 }
  0x8c   : > { %s296_s16 = scalar_lea.sflag (!%p1603_p13), [#allocation3], %s1475_s2  ;;  %s299_s9 = scalar_lea.vmem (!%p1603_p13), [#allocation2], %s1478_s14 }
  0x92   : > { %1176 = dma.done.wait (%p1604_p8), %s296_s16, 128  }
  0x93   : > { %1178 = vsyncadd (%p1604_p8), %s296_s16, 4294967168  ;;  %s304_s7 = sand.u32 1, %s1296_s27   ;;  %s308_s18 = scalar_lea.vmem [#allocation5], %s1478_s14 }
  0x94   : > { %s305_s13 = scalar_lea.sflag [#allocation6], %s304_s7 }
  0x95   : > { %1180 = dma.done.wait (%p1604_p8), %s305_s13, 128  }
  0x96   : > { %1182 = vsyncadd (%p1604_p8), %s305_s13, 4294967168  ;;  %p1605_p11 = scmp.eq.s32.totalorder %s1296_s27, 0 }
  0x98   : > { %1184 = dma.done.wait (%p1605_p11), [#allocation6], 512   ;;  %p1606_p2 = pmov %p1605_p11 }
  0x9a   : > { %1186 = vsyncadd (%p1606_p2), [#allocation6], 4294966784  ;;  %p1607_p12 = pmov %p1606_p2 }
  0x9b   : > { %p1608_p0 = pmov %p1606_p2 }
  0x9c   : > { %1188 = dma.done.wait (%p1607_p12), [#allocation9], 512  }
  0x9d   : > { %1190 = vsyncadd (%p1608_p0), [#allocation9], 4294966784  ;;  %v1225_v0 = vmov 0.0|0.0   ;;  %vm1226_vm0 = vmmov 0   ;;  %v1227_v1 = vmov 0.0   ;;  %v438_v2 = vld [vmem:[#allocation8] sm:$0xff] }
  0x9e   : > { %903 = vmatprep.subr.bf16.mxu1 %v1225_v0  ;;  %897 = vmatprep.subr.bf16.mxu0 %v1225_v0  ;;  %v439_v3 = vld [vmem:[#allocation8 + $0x8] sm:$0xff]  ;;  %v352_v4 = vld [vmem:[#allocation7] sm:$0xff]  ;;  %v440_v7 = vld [vmem:[#allocation8 + $0x10] sm:$0xff]  ;;  %vm363_vm1 = vcmask 261120   ;;  %s1228_s17 = smov 96   ;;  %vm598_vm2 = vcmask 64512  }
  0x9f   : > { %884 = vmatprep.mubr.msk.f32.mxu1 %vm1226_vm0, %v1227_v1  ;;  %873 = vmatprep.mubr.msk.f32.mxu0 %vm1226_vm0, %v1227_v1  ;;  %v904_v5 = vpack.c.bf16 %v439_v3, %v438_v2  ;;  %v353_v6 = vld [vmem:[#allocation7 + $0x8] sm:$0xff]  ;;  %v441_v8 = vld [vmem:[#allocation8 + $0x18] sm:$0xff]  ;;  %v354_v10 = vld [vmem:[#allocation7 + $0x10] sm:$0xff]  ;;  %s848_s4 = sshll.u32 %s1209_s24, 7  ;;  %s349_s28 = scalar_lea.vmem [#allocation10], %s1478_s14 }
  0xa0   : > { %v898_v9 = vpack.c.bf16 %v353_v6, %v352_v4  ;;  %v355_v11 = vld [vmem:[#allocation7 + $0x18] sm:$0xff]  ;;  %v907_v12 = vpack.c.bf16 %v441_v8, %v440_v7  ;;  %v350_v15 = vld [vmem:[%s299_s9] sm:$0xff]  ;;  %s702_s25 = sshll.u32 %s349_s28, 4  ;;  %s1526_s11 = scalar_lea.hbm %s1582_s6, %s848_s4  ;;  %s1528_s25 = int_to_ptr.vmem [resolvable:$true] %s702_s25 }
  0xa1   : > { %905 = vmatpush3.bf16.msra.mxu1 %v904_v5  ;;  %v901_v13 = vpack.c.bf16 %v355_v11, %v354_v10  ;;  %v351_v14 = vld [vmem:[%s308_s18] sm:$0xff]  ;;  %v842_v16 = vld [vmem:[%s1581_s5] ss:$0 sm:$0xff]  ;;  %s688_s19 = scalar_lea.sflag [#allocation4], %s1475_s2  ;;  %s1123_s16 = scalar_lea.vmem %s1528_s25, 128 }
  0xa2   : > { %899 = vmatpush3.bf16.msra.mxu0 %v898_v9  ;;  %906 = vmatprep.subr.bf16.mxu1 %v1225_v0  ;;  %v840_v17 = vld [vmem:[%s1579_s3] ss:$0 sm:$0xff]  ;;  %p1124_p1 = scmp.ne.s32.totalorder %s1528_s25, %s1123_s16  ;;  %p1609_p6 = scmp.ne.s32.totalorder %s1600_s10, 0 }
  0xa3   : > { %900 = vmatprep.subr.bf16.mxu0 %v1225_v0  ;;  %s1229_s24 = smov [#allocation10]  }
  0xa4   : > { %p1125_p10 = pnand %p1124_p1, %p1609_p6  ;;  %s1127_s14 = sshll.u32 %s1229_s24, 4  ;;  %s1128_s14 = int_to_ptr.vmem [resolvable:$false] %s1127_s14 }
  0xa5   : > { %908 = vmatpush3.bf16.msra.mxu1 %v907_v12  ;;  %s1129_s9 = scalar_lea.vmem %s1128_s14, 256  ;;  %p1130_p4 = scmp.lt.s32.totalorder %s1528_s25, %s1128_s14 }
  0xa6   : > { %902 = vmatpush3.bf16.msra.mxu0 %v901_v13  ;;  %892 = vmatprep.subr.mxu1 %v1227_v1  ;;  %p1126_p3 = pneg %p1125_p10  ;;  %p1131_p9 = scmp.lt.s32.totalorder %s1129_s9, %s1123_s16 }
  0xa7   : > { %887 = vmatprep.subr.mxu0 %v1227_v1 }
  0xa8   : > { %885 = vmatmul.mubr.msk.f32.vlgmr.msra.gmra.mrb[0].mxu1 %vm363_vm1, %v351_v14  ;;  %p1132_p5 = por %p1131_p9, %p1130_p4 }
  0xa9   : > { %874 = vmatmul.mubr.msk.f32.vlgmr.msra.gmra.mrb[0].mxu0 %vm363_vm1, %v350_v15  ;;  %894 = vmatprep.mubr.msk.f32.mxu1 %vm1226_vm0, %v1227_v1 }
  0xaa   : > { %889 = vmatprep.mubr.msk.f32.mxu0 %vm1226_vm0, %v1227_v1  ;;  %p1133_p7 = pnand %p1132_p5, %p1126_p3 }
 0x17b   : > { %v518_v18 = vpop.f32.mrb[0].mxu1 }
 0x17c   : > { %v519_v19 = vadd.f32 %v842_v16, %v518_v18  ;;  %v433_v20 = vpop.f32.mrb[0].mxu0  ;;  %v886_v21 = vpop.f32.mrb[1].mxu1 }
 0x17d   : > { %v434_v22 = vadd.f32 %v840_v17, %v433_v20  ;;  %v875_v23 = vpop.f32.mrb[1].mxu0 }
 0x17e   : > { %610 = vrot.lane.b32.xlu1 %v519_v19, %s1228_s17  ;;  %888 = vmatpush3.xpose.msk.msra.mxu0 %vm363_vm1, %v519_v19 }
 0x17f   : > { %v437_v24 = vmul.f32 0.17677669, %v434_v22 }
 0x181   : > { %890 = vmatmul.mubr.msk.f32.vlgmr.msra.gmra.mrb[2].mxu0 %vm363_vm1, %v437_v24 }
 0x1f0   : > { %v611_v25 = vpop.permute.xlu1 %610 }
 0x1f1   : > { %893 = vmatpush3.msra.mxu1 %v611_v25 }
 0x254   : > { %v594_v26 = vpop.f32.mrb[2].mxu0 }
 0x255   : > { %v891_v27 = vpop.f32.mrb[3].mxu0  ;;  %v599_v28 = vsel %vm598_vm2, %v594_v26, -inf }
 0x256   : > { %600 = vmax.xlane.f32.xlu0 %v599_v28 }
 0x2e3   : > { %v601_v29 = vpop.xlane.xlu0 %600 }
 0x2e4   : > { %v602_v30 = vsub.f32 %v594_v26, %v601_v29 }
 0x2e6   : > { %v603_v31 = vmul.f32 1.442695, %v602_v30 }
 0x2e8   : > { %1003 = vpow2.f32 %v603_v31 }
 0x2f2   : > { %v1004_v32 = vpop.eup %1003 }
 0x2f3   : > { %v605_v33 = vsel %vm598_vm2, %v1004_v32, 0.0 }
 0x2f4   : > { %606 = vadd.xlane.f32.xlu0 %v605_v33 }
 0x381   : > { %v607_v34 = vpop.xlane.xlu0 %606 }
 0x382   : > { %1005 = vrcp.f32 %v607_v34 }
 0x38c   : > { %v1006_v35 = vpop.eup %1005 }
 0x38d   : > { %v609_v36 = vmul.f32 %v1006_v35, %v1004_v32 }
 0x38f   : > { %895 = vmatmul.mubr.msk.f32.vlgmr.msra.gmra.mrb[2].mxu1 %vm598_vm2, %v609_v36 }
 0x462   : > { %v682_v37 = vpop.f32.mrb[2].mxu1 }
 0x463   : > { %686 = vst.msk [vmem:[%s349_s28] sm:$0xff] %vm363_vm1, %v682_v37  ;;  %v896_v38 = vpop.f32.mrb[3].mxu1 }
 0x464   : > { %1136 = shalt.err (!%p1133_p7)
}
 0x465   : > { %s1137_s2 = scalar_lea.hbm %s1526_s11, 128  ;;  %s1141_s18 = scalar_lea.hbm %s1582_s6, 256 }
 0x466   : > { %p1138_p13 = scmp.ne.s32.totalorder %s1526_s11, %s1137_s2  ;;  %p1142_p2 = scmp.lt.u32.totalorder %s1526_s11, %s1582_s6 }
 0x467   : > { %p1143_p12 = scmp.lt.u32.totalorder %s1141_s18, %s1137_s2  ;;  %p1145_p1 = scmp.lt.u32.totalorder %s1137_s2, %s1526_s11 }
 0x468   : > { %p1139_p8 = pnand %p1138_p13, %p1609_p6 }
 0x469   : > { %p1144_p0 = por %p1143_p12, %p1142_p2 }
 0x46a   : > { %p1140_p11 = pneg %p1139_p8 }
 0x46b   : > { %p1146_p10 = por %p1145_p1, %p1144_p0 }
 0x46d   : > { %p1147_p3 = pnand %p1146_p10, %p1140_p11 }
 0x46f   : > { %1150 = shalt.err (!%p1147_p3)
}
 0x470   : > { %921 = dma.vmem_to_hbm [thread:$0]  (%p1609_p6), %s1528_s25, 128, %s1526_s11, %s688_s19  }
 0x471 PF: > { %s714_s8 = sand.u32 1, %s1197_s21   ;;  %p1610_p4 = scmp.ne.s32.totalorder %s1593_s30, 0 }
 0x472   : > { %p1611_p9 = scmp.ge.s32.totalorder %s1217_s26, 2  ;;  %s715_s15 = scalar_lea.sflag [#allocation4], %s714_s8 }
 0x474   : > { %p938_p5 = pnand %p1611_p9, %p1610_p4 }
 0x476   : > { %1192 = dma.done.wait (!%p938_p5), %s715_s15, 128  }
 0x477   : > { %1194 = vsyncadd (!%p938_p5), %s715_s15, 4294967168  ;;  %s26_s26 = sadd.s32 1, %s1217_s26   ;;  %s1612_s10 = sld [smem:[#allocation18_spill]] }
 0x478   : > { %p23_p7 = scmp.ge.s32.totalorder %s26_s26, 4   ;;  %s1613_s24 = sld [smem:[#allocation16_spill]] }
 0x479   : > { %s1614_s25 = sld [smem:[#allocation17_spill]]  ;;  %s1615_s21 = smov %s1201_s22 }
 0x47a   : > { %s1616_s22 = smov %s1205_s23  ;;  %25 = sbr.rel (!%p23_p7) target bundleno = 12 (0xc), region = 110 }
 0x47d   : > { %s1617_s23 = smov %s1612_s10 }
 0x481   :  { %720 = vsyncpa [#allocation3], 1 }
 0x482   :  { %722 = vsyncpa [#allocation3 + $0x1], 1 }
 0x483   :  { %723 = vsyncpa [#allocation6], 1 }
 0x484   :  { %725 = vsyncpa [#allocation6 + $0x1], 1 }
 0x485   :  { %726 = vsyncpa [#allocation9], 1 }
 0x486   :  { %727 = vsyncpa [#allocation4], 1 }
 0x487   :  { %729 = vsyncpa [#allocation4 + $0x1], 1 }

</bundles_post_ra>
